<compile_context>
chip_gen: v7x
topology: tpu7x:2x2x1
jax: 0.10.0
libtpu: 0.0.40
codegen_flags: <defaults>
</compile_context>

<pallas_src>
import jax
import jax.numpy as jnp
from jax.experimental import pallas as pl
from jax.experimental.pallas import tpu as pltpu

LANES = 128
SUBLANES = 8


def _minmax_kernel(x_ref, min_ref, max_ref):
    # x_ref: (tile_rows, 128) block in VMEM; tile_rows is a multiple of 8.
    xb = x_ref[...].astype(jnp.float32)                     # f32 accumulation
    xb3 = xb.reshape(xb.shape[0] // SUBLANES, SUBLANES, LANES)
    # Elementwise (VPU) fold of all vregs in the tile down to one (8, 128) vreg.
    min_ref[...] = jnp.min(xb3, axis=0)
    max_ref[...] = jnp.max(xb3, axis=0)


def min_max_observer(x, *, tile_rows=2048):
    """Returns (x, min_val, max_val) matching MinMaxObserver.forward + buffers."""
    total = x.size

    flat = x.reshape(-1)
    rows = pl.cdiv(total, LANES)
    rows8 = ((rows + SUBLANES - 1) // SUBLANES) * SUBLANES   # sublane-aligned

    tr = min(tile_rows, rows8)
    tr = ((tr + SUBLANES - 1) // SUBLANES) * SUBLANES        # multiple of 8
    grid_n = pl.cdiv(rows8, tr)
    padded_rows = grid_n * tr
    padded_total = padded_rows * LANES

    # Edge-pad with a real element of x: padding never changes min/max.
    if padded_total != total:
        flat = jnp.pad(flat, (0, padded_total - total), mode="edge")
    x2d = flat.reshape(padded_rows, LANES)

    itemsize = jnp.dtype(x.dtype).itemsize
    cost = pl.CostEstimate(
        flops=2 * padded_total,
        transcendentals=0,
        bytes_accessed=padded_total * itemsize + 2 * grid_n * SUBLANES * LANES * 4,
    )

    pmin, pmax = pl.pallas_call(
        _minmax_kernel,
        out_shape=(
            jax.ShapeDtypeStruct((grid_n * SUBLANES, LANES), jnp.float32),
            jax.ShapeDtypeStruct((grid_n * SUBLANES, LANES), jnp.float32),
        ),
        grid_spec=pltpu.PrefetchScalarGridSpec(
            num_scalar_prefetch=0,
            grid=(grid_n,),
            in_specs=[pl.BlockSpec((tr, LANES), lambda i: (i, 0))],
            out_specs=(
                pl.BlockSpec((SUBLANES, LANES), lambda i: (i, 0)),
                pl.BlockSpec((SUBLANES, LANES), lambda i: (i, 0)),
            ),
        ),
        compiler_params=pltpu.CompilerParams(
            # Independent per-step partials: safe to shard across v7x's 2 TCs.
            dimension_semantics=("parallel",),
        ),
        cost_estimate=cost,
    )(x2d)

    # Tiny final reduce over lane-dense partials (done in plain JAX).
    min_val = jnp.min(pmin)
    max_val = jnp.max(pmax)

    # Identity pass-through handled in the wrapper: no kernel writeback needed.
    return x, min_val, max_val


if __name__ == "__main__":
    key = jax.random.PRNGKey(0)
    # NCHW input, small shapes: batch=2, channels=4, spatial=16x16
    x = jax.random.normal(key, (2, 4, 16, 16), dtype=jnp.float32)

    y, min_val, max_val = min_max_observer(x)
    jax.block_until_ready((y, min_val, max_val))

    # correctness checks against plain JAX reference
    assert jnp.array_equal(y, x), "forward must return x unchanged"
    assert jnp.allclose(min_val, jnp.min(x)), (min_val, jnp.min(x))
    assert jnp.allclose(max_val, jnp.max(x)), (max_val, jnp.max(x))

    # also exercise a ragged / non-128-divisible shape
    x2 = jax.random.normal(jax.random.PRNGKey(1), (3, 5, 7, 11), dtype=jnp.float32)
    y2, mn2, mx2 = min_max_observer(x2)
    jax.block_until_ready((y2, mn2, mx2))
    assert jnp.array_equal(y2, x2)
    assert jnp.allclose(mn2, jnp.min(x2)), (mn2, jnp.min(x2))
    assert jnp.allclose(mx2, jnp.max(x2)), (mx2, jnp.max(x2))

    print("KERNEL_OK")
</pallas_src>

<mosaic_0001>
module attributes {stable_mosaic.version = 11 : i64} {
  func.func @_minmax_kernel(%arg0: i32, %arg1: memref<16x128xf32, #tpu.memory_space<vmem>>, %arg2: memref<8x128xf32, #tpu.memory_space<vmem>>, %arg3: memref<8x128xf32, #tpu.memory_space<vmem>>) attributes {dimension_semantics = [#tpu.dimension_semantics<parallel>], iteration_bounds = array<i64: 1>, scalar_prefetch = 0 : i64, scratch_operands = 0 : i64, tpu.core_type = #tpu.core_type<tc>, window_params = [{transform_indices = @transform_0, window_bounds = array<i64: 16, 128>}, {transform_indices = @transform_1, window_bounds = array<i64: 8, 128>}, {transform_indices = @transform_2, window_bounds = array<i64: 8, 128>}]} {
    %c0 = arith.constant 0 : index
    %c0_0 = arith.constant 0 : index
    %0 = vector.load %arg1[%c0, %c0_0] : memref<16x128xf32, #tpu.memory_space<vmem>>, vector<16x128xf32>
    %1 = vector.shape_cast %0 : vector<16x128xf32> to vector<2x8x128xf32>
    %cst = arith.constant dense<0x7F800000> : vector<8x128xf32>
    %2 = vector.multi_reduction <minimumf>, %1, %cst [0] : vector<2x8x128xf32> to vector<8x128xf32>
    %c0_1 = arith.constant 0 : index
    %c0_2 = arith.constant 0 : index
    %3 = vector.load %arg2[%c0_1, %c0_2] : memref<8x128xf32, #tpu.memory_space<vmem>>, vector<8x128xf32>
    tpu.vector_store %arg2[%c0_1, %c0_2], %2 {strides = array<i32>} : memref<8x128xf32, #tpu.memory_space<vmem>>, vector<8x128xf32>,
    %cst_3 = arith.constant dense<0xFF800000> : vector<8x128xf32>
    %4 = vector.multi_reduction <maximumf>, %1, %cst_3 [0] : vector<2x8x128xf32> to vector<8x128xf32>
    %c0_4 = arith.constant 0 : index
    %c0_5 = arith.constant 0 : index
    %5 = vector.load %arg3[%c0_4, %c0_5] : memref<8x128xf32, #tpu.memory_space<vmem>>, vector<8x128xf32>
    tpu.vector_store %arg3[%c0_4, %c0_5], %4 {strides = array<i32>} : memref<8x128xf32, #tpu.memory_space<vmem>>, vector<8x128xf32>,
    return
  }
  func.func @transform_0(%arg0: i32) -> (i32, i32) {
    %c0_i32 = arith.constant 0 : i32
    %c0_i32_0 = arith.constant 0 : i32
    return %arg0, %c0_i32 : i32, i32
  }
  func.func @transform_1(%arg0: i32) -> (i32, i32) {
    %c0_i32 = arith.constant 0 : i32
    %c0_i32_0 = arith.constant 0 : i32
    return %arg0, %c0_i32 : i32, i32
  }
  func.func @transform_2(%arg0: i32) -> (i32, i32) {
    %c0_i32 = arith.constant 0 : i32
    %c0_i32_0 = arith.constant 0 : i32
    return %arg0, %c0_i32 : i32, i32
  }
}

</mosaic_0001>

<bundles_post_ra>
// kernel: tpu_custom_call.1
= control target key start
LH: loop header
LB: loop body
LE: loop exit
PB: predicated region body
PF: predicated region fallthrough
CT: control target
= control target key end

     0   :  { %8 = vsyncpa [#allocation3], 0  ;;  %s194_s0 = inlined_call_operand.hbm [shape: f32[16,128], index: 0, kind: input, shape index: {}]   ;;  %s195_s1 = inlined_call_operand.hbm [shape: f32[8,128], index: 1, kind: output, shape index: {0}]   ;;  %s196_s2 = inlined_call_operand.hbm [shape: f32[8,128], index: 2, kind: output, shape index: {1}]  }
   0x1   :  { %9 = vsyncpa [#allocation4], 0 }
   0x2   :  { %10 = vsyncpa [#allocation7], 0  ;;  %s138_s9 = smov [#allocation2]   ;;  %s66_s13 = scalar_lea.hbm %s194_s0, 256 }
   0x3   :  { %s16_s10 = sshll.u32 %s138_s9, 4  ;;  %p67_p0 = scmp.ne.s32.totalorder %s194_s0, %s66_s13  ;;  %s17_s10 = int_to_ptr.vmem [resolvable:$true] %s16_s10 }
   0x4   :  { %p70_p1 = scmp.lt.u32.totalorder %s66_s13, %s194_s0 }
   0x6   :  { %p72_p2 = pnand %p70_p1, %p67_p0 }
   0x8   :  { %75 = shalt.err (!%p72_p2)
}
   0x9   :  { %s76_s18 = scalar_lea.vmem %s17_s10, 256  ;;  %p81_p4 = scmp.lt.s32.totalorder %s17_s10, %s17_s10 }
   0xa   :  { %p77_p3 = scmp.ne.s32.totalorder %s17_s10, %s76_s18  ;;  %p82_p5 = scmp.lt.s32.totalorder %s76_s18, %s76_s18 }
   0xc   :  { %p83_p6 = por %p82_p5, %p81_p4 }
   0xe   :  { %p84_p7 = pnand %p83_p6, %p77_p3 }
  0x10   :  { %87 = shalt.err (!%p84_p7)
}
  0x11   :  { %s139_s19 = smov 128   ;;  %s140_s20 = smov 8  }
  0x12   :  { %22 = dma.hbm_to_vmem [thread:$0]  %s194_s0, 256, %s17_s10, [#allocation3], %s139_s19, %s139_s19, %s140_s20  }
  0x13   :  { %132 = dma.done.wait [#allocation3], 256  }
  0x14   :  { %133 = vsyncadd [#allocation3], 4294967040  ;;  %s141_s23 = smov [#allocation5]   ;;  %s142_s25 = smov [#allocation6]   ;;  %v26_v0 = vld [vmem:[#allocation2] sm:$0xff]  ;;  %v27_v1 = vld [vmem:[#allocation2 + $0x8] sm:$0xff] }
  0x15   :  { %s38_s24 = sshll.u32 %s141_s23, 4  ;;  %s48_s26 = sshll.u32 %s142_s25, 4  ;;  %v28_v2 = vmin.f32 %v26_v0, %v27_v1  ;;  %v30_v3 = vmax.f32 %v26_v0, %v27_v1  ;;  %s39_s24 = int_to_ptr.vmem [resolvable:$true] %s38_s24  ;;  %s49_s26 = int_to_ptr.vmem [resolvable:$true] %s48_s26 }
  0x16   :  { %s88_s27 = scalar_lea.vmem %s39_s24, 128  ;;  %p93_p9 = scmp.lt.s32.totalorder %s39_s24, %s39_s24 }
  0x17   :  { %29 = vst [vmem:[#allocation5] sm:$0xff] %v28_v2  ;;  %31 = vst [vmem:[#allocation6] sm:$0xff] %v30_v3  ;;  %p89_p8 = scmp.ne.s32.totalorder %s39_s24, %s88_s27  ;;  %p94_p10 = scmp.lt.s32.totalorder %s88_s27, %s88_s27 }
  0x19   :  { %p95_p11 = por %p94_p10, %p93_p9 }
  0x1b   :  { %p96_p12 = pnand %p95_p11, %p89_p8 }
  0x1d   :  { %99 = shalt.err (!%p96_p12)
}
  0x1e   :  { %s100_s29 = scalar_lea.hbm %s195_s1, 128 }
  0x1f   :  { %p101_p13 = scmp.ne.s32.totalorder %s195_s1, %s100_s29  ;;  %p104_p0 = scmp.lt.u32.totalorder %s100_s29, %s195_s1 }
  0x21   :  { %p106_p1 = pnand %p104_p0, %p101_p13 }
  0x23   :  { %109 = shalt.err (!%p106_p1)
}
  0x24   :  { %41 = dma.vmem_to_hbm [thread:$0]  %s39_s24, 128, %s195_s1, [#allocation4]  }
  0x25   :  { %s110_s8 = scalar_lea.vmem %s49_s26, 128  ;;  %p115_p3 = scmp.lt.s32.totalorder %s49_s26, %s49_s26 }
  0x26   :  { %p111_p2 = scmp.ne.s32.totalorder %s49_s26, %s110_s8  ;;  %p116_p4 = scmp.lt.s32.totalorder %s110_s8, %s110_s8 }
  0x28   :  { %p117_p5 = por %p116_p4, %p115_p3 }
  0x2a   :  { %p118_p6 = pnand %p117_p5, %p111_p2 }
  0x2c   :  { %121 = shalt.err (!%p118_p6)
}
  0x2d   :  { %s122_s11 = scalar_lea.hbm %s196_s2, 128 }
  0x2e   :  { %p123_p7 = scmp.ne.s32.totalorder %s196_s2, %s122_s11  ;;  %p126_p8 = scmp.lt.u32.totalorder %s122_s11, %s196_s2 }
  0x30   :  { %p128_p9 = pnand %p126_p8, %p123_p7 }
  0x32   :  { %131 = shalt.err (!%p128_p9)
}
  0x33   :  { %51 = dma.vmem_to_hbm [thread:$0]  %s49_s26, 128, %s196_s2, [#allocation7]  }
  0x34   :  { %134 = dma.done.wait [#allocation4], 128  }
  0x35   :  { %135 = vsyncadd [#allocation4], 4294967168 }
  0x36   :  { %136 = dma.done.wait [#allocation7], 128  }
  0x37   :  { %137 = vsyncadd [#allocation7], 4294967168 }
  0x38   :  { %58 = vsyncpa [#allocation3], 1 }
  0x39   :  { %59 = vsyncpa [#allocation4], 1 }
  0x3a   :  { %60 = vsyncpa [#allocation7], 1 }

</bundles_post_ra>
